<compile_context>
chip_gen: v7x
topology: tpu7x:2x2x1
jax: 0.10.0
libtpu: 0.0.40
codegen_flags: <defaults>
</compile_context>

<pallas_src>
import functools
import math

import jax
import jax.numpy as jnp
from jax.experimental import pallas as pl
from jax.experimental.pallas import tpu as pltpu

REGRESSION_CN = 5
BBOX_XFORM_CLIP = math.log(1000.0 / 16.0)
LANES = 128
SUBLANES = 8
BLOCK_SUBLANES = 512  # per-block sublane count for the gridded pass-1 kernel


# ----------------------------------------------------------------------------
# Pass 1: min_size keep-mask over the pre-NMS candidates (gridded, lane-dense)
# ----------------------------------------------------------------------------
def _mask_kernel(dwh_ref, awh_ref, logits_ref, score_ref, *, min_size):
    # dwh_ref / awh_ref: (2, BS, 128); logits_ref / score_ref: (BS, 128)
    dw = jnp.minimum(dwh_ref[0], BBOX_XFORM_CLIP)
    dh = jnp.minimum(dwh_ref[1], BBOX_XFORM_CLIP)
    pred_w = jnp.exp(dw) * awh_ref[0]
    pred_h = jnp.exp(dh) * awh_ref[1]
    keep = (pred_w >= min_size) & (pred_h >= min_size)
    # Raw logits (no sigmoid: monotonic, applied later to the final top-k).
    score_ref[...] = jnp.where(keep, logits_ref[...], -jnp.inf)


def masked_scores_pallas(dwh_cm, awh_cm, logits_cm, min_size):
    _, s, l = dwh_cm.shape
    bs = min(s, BLOCK_SUBLANES)
    grid = (pl.cdiv(s, bs),)
    kernel = functools.partial(_mask_kernel, min_size=float(min_size))
    return pl.pallas_call(
        kernel,
        out_shape=jax.ShapeDtypeStruct((s, l), jnp.float32),
        grid=grid,
        in_specs=[
            pl.BlockSpec((2, bs, l), lambda i: (0, i, 0)),
            pl.BlockSpec((2, bs, l), lambda i: (0, i, 0)),
            pl.BlockSpec((bs, l), lambda i: (i, 0)),
        ],
        out_specs=pl.BlockSpec((bs, l), lambda i: (i, 0)),
        compiler_params=pltpu.CompilerParams(
            dimension_semantics=("parallel",)),
    )(dwh_cm, awh_cm, logits_cm)


# ----------------------------------------------------------------------------
# Pass 2: RRPN box-coder decode + rect->bbox + clip, only on selected boxes
# ----------------------------------------------------------------------------
def _decode_kernel(deltas_ref, anchors_ref, rrect_ref, bbox_ref,
                   *, im_w, im_h):
    # deltas_ref / anchors_ref / rrect_ref: (5, BS, 128); bbox_ref: (4, BS, 128)
    dx = deltas_ref[0]
    dy = deltas_ref[1]
    dw = jnp.minimum(deltas_ref[2], BBOX_XFORM_CLIP)
    dh = jnp.minimum(deltas_ref[3], BBOX_XFORM_CLIP)
    da = deltas_ref[4]

    xc = anchors_ref[0]
    yc = anchors_ref[1]
    aw = anchors_ref[2]
    ah = anchors_ref[3]
    ath = anchors_ref[4]

    # RRPN box-coder decode (weights wx=wy=ww=wh=wa=1.0).
    pred_xc = dx * aw + xc
    pred_yc = dy * ah + yc
    pred_w = jnp.exp(dw) * aw
    pred_h = jnp.exp(dh) * ah
    pred_th = da * (180.0 / math.pi) + ath          # degrees (rrect output)
    th_rad = da + ath * (math.pi / 180.0)           # radians directly

    rrect_ref[0] = pred_xc
    rrect_ref[1] = pred_yc
    rrect_ref[2] = pred_w
    rrect_ref[3] = pred_h
    rrect_ref[4] = pred_th

    # convert_rects_to_bboxes + clip_to_image (TO_REMOVE = 1).
    cos_t = jnp.abs(jnp.cos(th_rad))
    sin_t = jnp.abs(jnp.sin(th_rad))
    w_half = 0.5 * (pred_w * cos_t + pred_h * sin_t)
    h_half = 0.5 * (pred_w * sin_t + pred_h * cos_t)
    bbox_ref[0] = jnp.clip(pred_xc - w_half, 0.0, im_w - 1.0)
    bbox_ref[1] = jnp.clip(pred_yc - h_half, 0.0, im_h - 1.0)
    bbox_ref[2] = jnp.clip(pred_xc + w_half, 0.0, im_w - 1.0)
    bbox_ref[3] = jnp.clip(pred_yc + h_half, 0.0, im_h - 1.0)


def decode_pallas(deltas_cm, anchors_cm, im_w, im_h):
    _, s, l = deltas_cm.shape
    bs = min(s, BLOCK_SUBLANES)
    grid = (pl.cdiv(s, bs),)
    kernel = functools.partial(
        _decode_kernel, im_w=float(im_w), im_h=float(im_h))
    return pl.pallas_call(
        kernel,
        out_shape=(
            jax.ShapeDtypeStruct((REGRESSION_CN, s, l), jnp.float32),
            jax.ShapeDtypeStruct((4, s, l), jnp.float32),
        ),
        grid=grid,
        in_specs=[
            pl.BlockSpec((REGRESSION_CN, bs, l), lambda i: (0, i, 0)),
            pl.BlockSpec((REGRESSION_CN, bs, l), lambda i: (0, i, 0)),
        ],
        out_specs=(
            pl.BlockSpec((REGRESSION_CN, bs, l), lambda i: (0, i, 0)),
            pl.BlockSpec((4, bs, l), lambda i: (0, i, 0)),
        ),
        compiler_params=pltpu.CompilerParams(
            dimension_semantics=("parallel",)),
    )(deltas_cm, anchors_cm)


# ----------------------------------------------------------------------------
# Layout helpers: (N, T, C) <-> lane-dense component-major (C, S, 128) slabs,
# with S padded to a multiple of 8 so every plane is whole (8,128) vregs.
# ----------------------------------------------------------------------------
def _slab_geometry(m):
    s = -(-m // (SUBLANES * LANES)) * SUBLANES
    return s, s * LANES - m


def _to_cm(x_ntc, c, pad, s):
    x = jnp.transpose(x_ntc, (2, 0, 1)).reshape(c, -1)
    if pad:
        x = jnp.pad(x, ((0, 0), (0, pad)))
    return x.reshape(c, s, LANES)


def _from_cm(x_csl, c, m, n, p):
    x = x_csl.reshape(c, -1)[:, :m].reshape(c, n, p)
    return jnp.transpose(x, (1, 2, 0))


# ----------------------------------------------------------------------------
# RPNPostProcessor wrapper (single FPN level, inference path)
# ----------------------------------------------------------------------------
class RPNPostProcessorPallas:
    def __init__(self, pre_nms_top_n, post_nms_top_n, nms_thresh, min_size,
                 fpn_post_nms_top_n=None):
        self.pre_nms_top_n = pre_nms_top_n
        self.post_nms_top_n = post_nms_top_n
        self.nms_thresh = nms_thresh
        self.min_size = min_size
        self.fpn_post_nms_top_n = (
            post_nms_top_n if fpn_post_nms_top_n is None else fpn_post_nms_top_n
        )

    def forward_for_single_feature_map(self, anchor_rrects, image_size,
                                       objectness, box_regression):
        N, A, H, W = objectness.shape
        HW = H * W
        K = A * HW
        T = min(self.pre_nms_top_n, K)

        # sigmoid is monotonic -> top_k directly on raw logits in the native
        # (a-major) flat layout; no full-map sigmoid, no full-map transpose.
        logits_flat = objectness.reshape(N, K)
        logits_top, topk_idx = jax.lax.top_k(logits_flat, T)      # (N, T)

        a_idx = topk_idx // HW
        hw_idx = topk_idx % HW
        anchor_idx = hw_idx * A + a_idx     # anchors live in (h, w, a) order

        breg_flat = box_regression.reshape(N, A * REGRESSION_CN * HW)
        anch_flat = anchor_rrects.reshape(N, K * REGRESSION_CN)

        # Pass 1 only needs dw, dh (components 2, 3) and anchor w, h.
        comp_wh = jnp.array([2, 3], dtype=topk_idx.dtype)
        dwh_src = (a_idx[:, :, None] * REGRESSION_CN + comp_wh) * HW \
            + hw_idx[:, :, None]                                   # (N, T, 2)
        dwh_top = jnp.take_along_axis(
            breg_flat, dwh_src.reshape(N, 2 * T), axis=1).reshape(N, T, 2)
        awh_src = anchor_idx[:, :, None] * REGRESSION_CN + comp_wh
        awh_top = jnp.take_along_axis(
            anch_flat, awh_src.reshape(N, 2 * T), axis=1).reshape(N, T, 2)

        # Lane-dense slabs over the pre-NMS candidates.
        M = N * T
        S, pad = _slab_geometry(M)
        dwh_cm = _to_cm(dwh_top, 2, pad, S)
        awh_cm = _to_cm(awh_top, 2, pad, S)
        logits_cm = logits_top.reshape(1, M)
        if pad:
            logits_cm = jnp.pad(logits_cm, ((0, 0), (0, pad)))  # 0-pad is fine
        logits_cm = logits_cm.reshape(S, LANES)

        scores_cm = masked_scores_pallas(dwh_cm, awh_cm, logits_cm,
                                         self.min_size)
        masked_logits = scores_cm.reshape(-1)[:M].reshape(N, T)

        # TODO(synk): RotateNMS replaced by score-ordered top-k selection;
        # boxes failing min_size carry -inf masked logits (score -> 0).
        post_n = min(self.post_nms_top_n, T)
        sel_logits, sel_idx = jax.lax.top_k(masked_logits, post_n)
        scores = jax.nn.sigmoid(sel_logits)                       # (N, post_n)

        # Gather full deltas / anchors for ONLY the selected candidates.
        final_idx = jnp.take_along_axis(topk_idx, sel_idx, axis=1)
        a2 = final_idx // HW
        hw2 = final_idx % HW
        comp = jnp.arange(REGRESSION_CN, dtype=final_idx.dtype)
        del_src = (a2[:, :, None] * REGRESSION_CN + comp) * HW \
            + hw2[:, :, None]                                     # (N, P, 5)
        deltas_sel = jnp.take_along_axis(
            breg_flat, del_src.reshape(N, post_n * REGRESSION_CN), axis=1
        ).reshape(N, post_n, REGRESSION_CN)
        anchors_sel = jnp.take_along_axis(
            anchor_rrects, (hw2 * A + a2)[:, :, None], axis=1)    # (N, P, 5)

        M2 = N * post_n
        S2, pad2 = _slab_geometry(M2)
        deltas_cm = _to_cm(deltas_sel, REGRESSION_CN, pad2, S2)
        anchors_cm = _to_cm(anchors_sel, REGRESSION_CN, pad2, S2)

        im_w, im_h = image_size
        rrects_cm, bboxes_cm = decode_pallas(deltas_cm, anchors_cm, im_w, im_h)

        rrects = _from_cm(rrects_cm, REGRESSION_CN, M2, N, post_n)
        bboxes = _from_cm(bboxes_cm, 4, M2, N, post_n)
        return bboxes, rrects, scores

    def forward(self, anchor_rrects, image_size, objectness_list,
                box_regression_list):
        # single-level case (num_levels == 1): no select_over_all_levels,
        # inference path (no add_gt_proposals).
        assert len(objectness_list) == 1 and len(box_regression_list) == 1
        return self.forward_for_single_feature_map(
            anchor_rrects, image_size, objectness_list[0],
            box_regression_list[0])


# ----------------------------------------------------------------------------
# Deterministic synthetic inputs
# ----------------------------------------------------------------------------
def make_anchor_rrects(N, A, H, W, stride):
    # (h, w, a) flatten ordering (matches permute_and_flatten output ordering)
    ys, xs = jnp.meshgrid(
        jnp.arange(H, dtype=jnp.float32), jnp.arange(W, dtype=jnp.float32),
        indexing="ij",
    )
    xc = (xs + 0.5) * stride  # (H, W)
    yc = (ys + 0.5) * stride
    anchor_wh = jnp.array(
        [[8.0, 8.0], [8.0, 16.0], [16.0, 8.0], [16.0, 16.0]],
        dtype=jnp.float32)[:A]
    anchor_th = jnp.array([0.0, 30.0, -30.0, 45.0], dtype=jnp.float32)[:A]

    xc_b = jnp.broadcast_to(xc[:, :, None], (H, W, A))
    yc_b = jnp.broadcast_to(yc[:, :, None], (H, W, A))
    w_b = jnp.broadcast_to(anchor_wh[None, None, :, 0], (H, W, A))
    h_b = jnp.broadcast_to(anchor_wh[None, None, :, 1], (H, W, A))
    t_b = jnp.broadcast_to(anchor_th[None, None, :], (H, W, A))
    rrects = jnp.stack([xc_b, yc_b, w_b, h_b, t_b], axis=-1).reshape(-1, 5)
    return jnp.broadcast_to(rrects[None], (N, rrects.shape[0], 5))


if __name__ == "__main__":
    N, A, H, W = 2, 4, 16, 16
    stride = 4
    image_size = (W * stride, H * stride)  # (im_w, im_h) = (64, 64)

    key = jax.random.PRNGKey(0)
    k1, k2 = jax.random.split(key)
    objectness = jax.random.normal(k1, (N, A, H, W), dtype=jnp.float32)
    box_regression = 0.1 * jax.random.normal(
        k2, (N, A * REGRESSION_CN, H, W), dtype=jnp.float32)
    anchor_rrects = make_anchor_rrects(N, A, H, W, stride)

    post = RPNPostProcessorPallas(
        pre_nms_top_n=128, post_nms_top_n=32, nms_thresh=0.7, min_size=2)

    bboxes, rrects, scores = post.forward(
        anchor_rrects, image_size, [objectness], [box_regression])
    jax.block_until_ready((bboxes, rrects, scores))

    assert bboxes.shape == (N, 32, 4)
    assert rrects.shape == (N, 32, 5)
    assert scores.shape == (N, 32)
    assert bool(jnp.all(jnp.isfinite(bboxes)))
    assert bool(jnp.all(jnp.isfinite(rrects)))
    assert bool(jnp.all(jnp.isfinite(scores)))
    print("KERNEL_OK")
</pallas_src>

<mosaic_0001>
module attributes {stable_mosaic.version = 11 : i64} {
  func.func @_mask_kernel(%arg0: i32, %arg1: memref<2x8x128xf32, #tpu.memory_space<vmem>>, %arg2: memref<2x8x128xf32, #tpu.memory_space<vmem>>, %arg3: memref<8x128xf32, #tpu.memory_space<vmem>>, %arg4: memref<8x128xf32, #tpu.memory_space<vmem>>) attributes {dimension_semantics = [#tpu.dimension_semantics<parallel>], iteration_bounds = array<i64: 1>, scalar_prefetch = 0 : i64, scratch_operands = 0 : i64, tpu.core_type = #tpu.core_type<tc>, window_params = [{transform_indices = @transform_0, window_bounds = array<i64: 2, 8, 128>}, {transform_indices = @transform_1, window_bounds = array<i64: 2, 8, 128>}, {transform_indices = @transform_2, window_bounds = array<i64: 8, 128>}, {transform_indices = @transform_3, window_bounds = array<i64: 8, 128>}]} {
    %c0 = arith.constant 0 : index
    %c0_0 = arith.constant 0 : index
    %c0_1 = arith.constant 0 : index
    %0 = vector.load %arg1[%c0, %c0_0, %c0_1] : memref<2x8x128xf32, #tpu.memory_space<vmem>>, vector<1x8x128xf32>
    %1 = vector.shape_cast %0 : vector<1x8x128xf32> to vector<8x128xf32>
    %cst = arith.constant 4.13516665 : f32
    %2 = vector.broadcast %cst : f32 to vector<8x128xf32>
    %3 = arith.minimumf %1, %2 : vector<8x128xf32>
    %c1 = arith.constant 1 : index
    %c0_2 = arith.constant 0 : index
    %c0_3 = arith.constant 0 : index
    %4 = vector.load %arg1[%c1, %c0_2, %c0_3] : memref<2x8x128xf32, #tpu.memory_space<vmem>>, vector<1x8x128xf32>
    %5 = vector.shape_cast %4 : vector<1x8x128xf32> to vector<8x128xf32>
    %cst_4 = arith.constant 4.13516665 : f32
    %6 = vector.broadcast %cst_4 : f32 to vector<8x128xf32>
    %7 = arith.minimumf %5, %6 : vector<8x128xf32>
    %8 = math.exp %3 : vector<8x128xf32>
    %c0_5 = arith.constant 0 : index
    %c0_6 = arith.constant 0 : index
    %c0_7 = arith.constant 0 : index
    %9 = vector.load %arg2[%c0_5, %c0_6, %c0_7] : memref<2x8x128xf32, #tpu.memory_space<vmem>>, vector<1x8x128xf32>
    %10 = vector.shape_cast %9 : vector<1x8x128xf32> to vector<8x128xf32>
    %11 = arith.mulf %8, %10 : vector<8x128xf32>
    %12 = math.exp %7 : vector<8x128xf32>
    %c1_8 = arith.constant 1 : index
    %c0_9 = arith.constant 0 : index
    %c0_10 = arith.constant 0 : index
    %13 = vector.load %arg2[%c1_8, %c0_9, %c0_10] : memref<2x8x128xf32, #tpu.memory_space<vmem>>, vector<1x8x128xf32>
    %14 = vector.shape_cast %13 : vector<1x8x128xf32> to vector<8x128xf32>
    %15 = arith.mulf %12, %14 : vector<8x128xf32>
    %cst_11 = arith.constant 2.000000e+00 : f32
    %16 = vector.broadcast %cst_11 : f32 to vector<8x128xf32>
    %17 = arith.cmpf oge, %11, %16 : vector<8x128xf32>
    %cst_12 = arith.constant 2.000000e+00 : f32
    %18 = vector.broadcast %cst_12 : f32 to vector<8x128xf32>
    %19 = arith.cmpf oge, %15, %18 : vector<8x128xf32>
    %20 = arith.andi %17, %19 : vector<8x128xi1>
    %c0_13 = arith.constant 0 : index
    %c0_14 = arith.constant 0 : index
    %21 = vector.load %arg3[%c0_13, %c0_14] : memref<8x128xf32, #tpu.memory_space<vmem>>, vector<8x128xf32>
    %cst_15 = arith.constant 0xFF800000 : f32
    %22 = vector.broadcast %cst_15 : f32 to vector<8x128xf32>
    %23 = arith.select %20, %21, %22 : vector<8x128xi1>, vector<8x128xf32>
    %c0_16 = arith.constant 0 : index
    %c0_17 = arith.constant 0 : index
    %24 = vector.load %arg4[%c0_16, %c0_17] : memref<8x128xf32, #tpu.memory_space<vmem>>, vector<8x128xf32>
    tpu.vector_store %arg4[%c0_16, %c0_17], %23 {strides = array<i32>} : memref<8x128xf32, #tpu.memory_space<vmem>>, vector<8x128xf32>,
    return
  }
  func.func @transform_0(%arg0: i32) -> (i32, i32, i32) {
    %c0_i32 = arith.constant 0 : i32
    %c0_i32_0 = arith.constant 0 : i32
    %c0_i32_1 = arith.constant 0 : i32
    return %c0_i32, %arg0, %c0_i32_0 : i32, i32, i32
  }
  func.func @transform_1(%arg0: i32) -> (i32, i32, i32) {
    %c0_i32 = arith.constant 0 : i32
    %c0_i32_0 = arith.constant 0 : i32
    %c0_i32_1 = arith.constant 0 : i32
    return %c0_i32, %arg0, %c0_i32_0 : i32, i32, i32
  }
  func.func @transform_2(%arg0: i32) -> (i32, i32) {
    %c0_i32 = arith.constant 0 : i32
    %c0_i32_0 = arith.constant 0 : i32
    return %arg0, %c0_i32 : i32, i32
  }
  func.func @transform_3(%arg0: i32) -> (i32, i32) {
    %c0_i32 = arith.constant 0 : i32
    %c0_i32_0 = arith.constant 0 : i32
    return %arg0, %c0_i32 : i32, i32
  }
}

</mosaic_0001>

<bundles_post_ra>
// kernel: tpu_custom_call.1
= control target key start
LH: loop header
LB: loop body
LE: loop exit
PB: predicated region body
PF: predicated region fallthrough
CT: control target
= control target key end

     0   :  { %8 = vsyncpa [#allocation3], 0  ;;  %s275_s0 = inlined_call_operand.hbm [shape: f32[2,8,128], index: 0, kind: input, shape index: {}]   ;;  %s276_s1 = inlined_call_operand.hbm [shape: f32[2,8,128], index: 1, kind: input, shape index: {}]   ;;  %s277_s2 = inlined_call_operand.hbm [shape: f32[8,128], index: 2, kind: input, shape index: {}]   ;;  %s278_s3 = inlined_call_operand.hbm [shape: f32[8,128], index: 3, kind: output, shape index: {}]  }
   0x1   :  { %9 = vsyncpa [#allocation6], 0 }
   0x2   :  { %10 = vsyncpa [#allocation4], 0  ;;  %s194_s12 = smov [#allocation5]   ;;  %s195_s14 = smov [#allocation2]  }
   0x3   :  { %s28_s13 = sshll.u32 %s194_s12, 4  ;;  %s16_s15 = sshll.u32 %s195_s14, 4  ;;  %s29_s13 = int_to_ptr.vmem [resolvable:$true] %s28_s13  ;;  %s220_s15 = int_to_ptr.vmem [resolvable:$true] %s16_s15 }
   0x4   :  { %s100_s18 = scalar_lea.hbm %s276_s1, 256 }
   0x5   :  { %p101_p0 = scmp.ne.s32.totalorder %s276_s1, %s100_s18  ;;  %p104_p1 = scmp.lt.u32.totalorder %s100_s18, %s276_s1 }
   0x7   :  { %p106_p2 = pnand %p104_p1, %p101_p0 }
   0x9   :  { %109 = shalt.err (!%p106_p2)
}
   0xa   :  { %s110_s23 = scalar_lea.vmem %s29_s13, 256  ;;  %p115_p4 = scmp.lt.s32.totalorder %s29_s13, %s29_s13 }
   0xb   :  { %p111_p3 = scmp.ne.s32.totalorder %s29_s13, %s110_s23  ;;  %p116_p5 = scmp.lt.s32.totalorder %s110_s23, %s110_s23 }
   0xd   :  { %p117_p6 = por %p116_p5, %p115_p4 }
   0xf   :  { %p118_p7 = pnand %p117_p6, %p111_p3 }
  0x11   :  { %121 = shalt.err (!%p118_p7)
}
  0x12   :  { %s196_s24 = smov 128   ;;  %s197_s25 = smov 8  }
  0x13   :  { %34 = dma.hbm_to_vmem [thread:$0]  %s276_s1, 256, %s29_s13, [#allocation6], %s196_s24, %s196_s24, %s197_s25  }
  0x14   :  { %s122_s30 = scalar_lea.hbm %s275_s0, 256 }
  0x15   :  { %p123_p8 = scmp.ne.s32.totalorder %s275_s0, %s122_s30  ;;  %p126_p9 = scmp.lt.u32.totalorder %s122_s30, %s275_s0 }
  0x17   :  { %p128_p10 = pnand %p126_p9, %p123_p8 }
  0x19   :  { %131 = shalt.err (!%p128_p10)
}
  0x1a   :  { %s132_s8 = scalar_lea.vmem %s220_s15, 256  ;;  %p137_p12 = scmp.lt.s32.totalorder %s220_s15, %s220_s15 }
  0x1b   :  { %p133_p11 = scmp.ne.s32.totalorder %s220_s15, %s132_s8  ;;  %p138_p13 = scmp.lt.s32.totalorder %s132_s8, %s132_s8 }
  0x1d   :  { %p139_p0 = por %p138_p13, %p137_p12 }
  0x1f   :  { %p140_p1 = pnand %p139_p0, %p133_p11 }
  0x21   :  { %143 = shalt.err (!%p140_p1)
}
  0x22   :  { %22 = dma.hbm_to_vmem [thread:$0]  %s275_s0, 256, %s220_s15, [#allocation3], %s196_s24, %s196_s24, %s197_s25  }
  0x23   :  { %s198_s10 = smov [#allocation7]   ;;  %s144_s14 = scalar_lea.hbm %s277_s2, 128 }
  0x24   :  { %s41_s11 = sshll.u32 %s198_s10, 4  ;;  %p145_p2 = scmp.ne.s32.totalorder %s277_s2, %s144_s14  ;;  %s42_s11 = int_to_ptr.vmem [resolvable:$true] %s41_s11 }
  0x25   :  { %p148_p3 = scmp.lt.u32.totalorder %s144_s14, %s277_s2 }
  0x27   :  { %p150_p4 = pnand %p148_p3, %p145_p2 }
  0x29   :  { %153 = shalt.err (!%p150_p4)
}
  0x2a   :  { %s154_s20 = scalar_lea.vmem %s42_s11, 128  ;;  %p159_p6 = scmp.lt.s32.totalorder %s42_s11, %s42_s11 }
  0x2b   :  { %p155_p5 = scmp.ne.s32.totalorder %s42_s11, %s154_s20  ;;  %p160_p7 = scmp.lt.s32.totalorder %s154_s20, %s154_s20 }
  0x2d   :  { %p161_p8 = por %p160_p7, %p159_p6 }
  0x2f   :  { %p162_p9 = pnand %p161_p8, %p155_p5 }
  0x31   :  { %165 = shalt.err (!%p162_p9)
}
  0x32   :  { %44 = dma.hbm_to_vmem [thread:$0]  %s277_s2, 128, %s42_s11, [#allocation6]  }
  0x33   :  { %188 = dma.done.wait [#allocation3], 256  }
  0x34   :  { %189 = vsyncadd [#allocation3], 4294967040 }
  0x35   :  { %190 = dma.done.wait [#allocation6], 384  }
  0x36   :  { %191 = vsyncadd [#allocation6], 4294966912  ;;  %v54_v0 = vld [vmem:[#allocation2] sm:$0xff]  ;;  %v57_v1 = vld [vmem:[#allocation2 + $0x8] sm:$0xff]  ;;  %s199_s21 = smov [#allocation8]  }
  0x37   :  { %v55_v2 = vmin.f32 %v54_v0, 4.1351666  ;;  %v58_v3 = vmin.f32 %v57_v1, 4.1351666  ;;  %v61_v6 = vld [vmem:[#allocation5] sm:$0xff]  ;;  %v66_v7 = vld [vmem:[#allocation5 + $0x8] sm:$0xff] }
  0x38   :  { %s80_s2 = sshll.u32 %s199_s21, 4  ;;  %v71_v12 = vld [vmem:[#allocation7] sm:$0xff]  ;;  %s81_s2 = int_to_ptr.vmem [resolvable:$true] %s80_s2 }
  0x39   :  { %v59_v4 = vmul.f32 1.442695, %v55_v2  ;;  %v63_v5 = vmul.f32 1.442695, %v58_v3  ;;  %s166_s22 = scalar_lea.vmem %s81_s2, 128  ;;  %p171_p11 = scmp.lt.s32.totalorder %s81_s2, %s81_s2 }
  0x3a   :  { %p167_p10 = scmp.ne.s32.totalorder %s81_s2, %s166_s22  ;;  %p172_p12 = scmp.lt.s32.totalorder %s166_s22, %s166_s22 }
  0x3b   :  { %96 = vpow2.f32 %v59_v4 }
  0x3c   :  { %98 = vpow2.f32 %v63_v5  ;;  %p173_p13 = por %p172_p12, %p171_p11 }
  0x3e   :  { %p174_p0 = pnand %p173_p13, %p167_p10 }
  0x45   :  { %v97_v8 = vpop.eup %96 }
  0x46   :  { %v99_v9 = vpop.eup %98  ;;  %v62_v10 = vmul.f32 %v97_v8, %v61_v6 }
  0x47   :  { %v67_v11 = vmul.f32 %v99_v9, %v66_v7 }
  0x48   :  { %vm68_vm0 = vcmp.ge.f32.partialorder %v62_v10, 2.0 }
  0x49   :  { %vm69_vm1 = vcmp.ge.f32.partialorder %v67_v11, 2.0 }
  0x4a   :  { %vm70_vm2 = vmand %vm68_vm0, %vm69_vm1 }
  0x4b   :  { %v72_v13 = vsel %vm70_vm2, %v71_v12, -inf }
  0x4c   :  { %73 = vst [vmem:[#allocation8] sm:$0xff] %v72_v13 }
  0x4d   :  { %177 = shalt.err (!%p174_p0)
}
  0x4e   :  { %s178_s25 = scalar_lea.hbm %s278_s3, 128 }
  0x4f   :  { %p179_p1 = scmp.ne.s32.totalorder %s278_s3, %s178_s25  ;;  %p182_p2 = scmp.lt.u32.totalorder %s178_s25, %s278_s3 }
  0x51   :  { %p184_p3 = pnand %p182_p2, %p179_p1 }
  0x53   :  { %187 = shalt.err (!%p184_p3)
}
  0x54   :  { %83 = dma.vmem_to_hbm [thread:$0]  %s81_s2, 128, %s278_s3, [#allocation4]  }
  0x55   :  { %192 = dma.done.wait [#allocation4], 128  }
  0x56   :  { %193 = vsyncadd [#allocation4], 4294967168 }
  0x57   :  { %87 = vsyncpa [#allocation3], 1 }
  0x58   :  { %88 = vsyncpa [#allocation6], 1 }
  0x59   :  { %89 = vsyncpa [#allocation4], 1 }

</bundles_post_ra>
